<compile_context>
chip_gen: v6e
topology: v6e:2x2x1
jax: 0.10.0
libtpu: 0.0.40
codegen_flags: <defaults>
</compile_context>

<pallas_src>
import jax
import jax.numpy as jnp
from jax.experimental import pallas as pl
from jax.experimental.pallas import tpu as pltpu


def _round_up(x, m):
    return ((x + m - 1) // m) * m


def _make_adapter_kernel(c_in, bn, use_mxu):
    def kernel(x_ref, w_ref, b_ref, o_ref):
        # x_ref: (BN, C_in, T)   w_ref: (C_out, C_in)   b_ref: (C_out, 1)
        # o_ref: (BN, C_out, T)  with T = lane-dense spatial tile
        b = b_ref[...].astype(jnp.float32)                      # (C_out, 1)
        if use_mxu:
            # Native-dtype operands (bf16 stays bf16 on the MXU); f32 accum.
            w = w_ref[...]
            for i in range(bn):
                acc = jnp.dot(w, x_ref[i],
                              preferred_element_type=jnp.float32) + b
                o_ref[i] = jnp.where(acc >= 0.0, acc,
                                     0.2 * acc).astype(o_ref.dtype)
        else:
            # VPU path: C_in broadcast-FMAs over the lane-dense spatial tile.
            w = w_ref[...].astype(jnp.float32)                  # (C_out, C_in)
            bias_tile = jnp.broadcast_to(b, o_ref.shape[1:])    # hoisted
            for i in range(bn):
                x = x_ref[i].astype(jnp.float32)                # (C_in, T)
                acc = bias_tile
                for k in range(c_in):
                    acc = acc + w[:, k:k + 1] * x[k:k + 1, :]
                o_ref[i] = jnp.where(acc >= 0.0, acc,
                                     0.2 * acc).astype(o_ref.dtype)

    return kernel


def adapter_block(x_nchw, weight, bias, *, tile_cols=None, batch_block=None):
    """1x1 Conv2d + LeakyReLU(0.2).

    x_nchw: (N, C_in, H, W); weight: (C_out, C_in, 1, 1); bias: (C_out,).
    Returns (N, C_out, H, W) with the same dtype as x_nchw.  Pass bf16
    activations (and params) for bf16 HBM I/O with f32 accumulation.
    """
    N, C_in, H, W = x_nchw.shape
    C_out = weight.shape[0]
    HW = H * W
    dtype = x_nchw.dtype
    itemsize = jnp.dtype(dtype).itemsize
    sub = max(8, 32 // itemsize)                 # sublane multiple (f32:8, bf16:16)
    C_in_pad = _round_up(C_in, sub)
    C_out_pad = _round_up(C_out, sub)

    # Free reshapes (NCHW is contiguous as (N, C, H*W)); no transposes.
    x3 = x_nchw.reshape(N, C_in, HW)
    # Match param dtype to the activations (no-op for f32; lets bf16 inputs
    # use the native bf16 MXU/VPU rate).
    w_mat = weight.reshape(C_out, C_in).astype(dtype)
    b_mat = bias.reshape(C_out, 1).astype(dtype)

    # --- spatial (lane) tile --------------------------------------------------
    # Target ~8 total grid steps; cap the in+out tile pair at ~1.5 MiB (HBM
    # efficiency already saturates at a few hundred KB per tile) and keep the
    # tile a multiple of 128 lanes (or the full extent).
    target_steps = 8
    if tile_cols is None:
        if HW <= 128:
            tile_cols = HW                                       # full extent
        else:
            pair_bytes_per_col = (C_in_pad + C_out_pad) * itemsize
            cap = max(128,
                      ((1 << 20) + (1 << 19)) // pair_bytes_per_col // 128 * 128)
            want = pl.cdiv(HW, max(1, target_steps // N))
            tile_cols = min(cap, _round_up(want, 128))
            if HW % 128 == 0:
                tile_cols = min(tile_cols, HW)
    assert tile_cols == HW or tile_cols % 128 == 0, "bad spatial tile size"
    spatial_steps = pl.cdiv(HW, tile_cols)

    # --- batch (leading) block ------------------------------------------------
    # For tiny per-step DMAs, block several batch images per grid step, but
    # never drop below 4 total steps (pipelining + v7x TC sharding).
    per_step_bytes = (C_in_pad + C_out_pad) * tile_cols * itemsize
    if batch_block is None:
        bn = 1
        while (bn * 2 <= N and N % (bn * 2) == 0
               and per_step_bytes * bn < (256 << 10)
               and (N // (bn * 2)) * spatial_steps >= 4):
            bn *= 2
    else:
        bn = batch_block
    assert N % bn == 0, "batch block must divide N"

    grid = (N // bn, spatial_steps)

    # --- VMEM budget: sublane-padded tiles, double buffering, f32 temporaries.
    in_tile_bytes = bn * C_in_pad * tile_cols * itemsize
    out_tile_bytes = bn * C_out_pad * tile_cols * itemsize
    tmp_bytes = 2 * bn * C_out_pad * tile_cols * 4        # f32 acc / cast copies
    w_bytes = (C_out_pad * _round_up(C_in, 128) + C_out_pad * 128) * itemsize
    vmem_limit = int(min(max(2 * (in_tile_bytes + out_tile_bytes)
                             + tmp_bytes + w_bytes + (2 << 20), 16 << 20),
                         32 << 20))

    kernel = _make_adapter_kernel(C_in, bn, use_mxu=(C_in > 32))

    cost = pl.CostEstimate(
        flops=2 * N * HW * C_in * C_out,
        transcendentals=0,
        bytes_accessed=int(N * (C_in + C_out) * HW * itemsize
                           + (C_out * C_in + C_out) * itemsize))

    out3 = pl.pallas_call(
        kernel,
        out_shape=jax.ShapeDtypeStruct((N, C_out, HW), dtype),
        grid_spec=pltpu.PrefetchScalarGridSpec(
            num_scalar_prefetch=0,
            grid=grid,
            in_specs=[
                # Streaming activation tile: bn batch images, spatial tile j.
                pl.BlockSpec((bn, C_in, tile_cols), lambda n, j: (n, 0, j)),
                # Weights / bias: constant index maps -> stay VMEM-resident.
                pl.BlockSpec((C_out, C_in), lambda n, j: (0, 0)),
                pl.BlockSpec((C_out, 1), lambda n, j: (0, 0)),
            ],
            out_specs=pl.BlockSpec((bn, C_out, tile_cols),
                                   lambda n, j: (n, 0, j)),
        ),
        compiler_params=pltpu.CompilerParams(
            dimension_semantics=("parallel", "parallel"),
            vmem_limit_bytes=vmem_limit),
        cost_estimate=cost,
    )(x3, w_mat, b_mat)

    # Free reshape back to NCHW.
    return out3.reshape(N, C_out, H, W)


def init_params(key, in_channel, output_channels):
    # Deterministic init mimicking PyTorch Conv2d default (kaiming-uniform-ish).
    kw, kb = jax.random.split(key)
    fan_in = in_channel * 1 * 1
    bound = 1.0 / (fan_in ** 0.5)
    weight = jax.random.uniform(
        kw, (output_channels, in_channel, 1, 1), jnp.float32, -bound, bound)
    bias = jax.random.uniform(
        kb, (output_channels,), jnp.float32, -bound, bound)
    return weight, bias


if __name__ == "__main__":
    key = jax.random.PRNGKey(0)
    k_x, k_p = jax.random.split(key)

    N, C_in, H, W = 2, 4, 16, 16
    C_out = 8

    x = jax.random.normal(k_x, (N, C_in, H, W), jnp.float32)
    weight, bias = init_params(k_p, C_in, C_out)

    out = adapter_block(x, weight, bias)
    out = jax.block_until_ready(out)

    # Reference check in plain JAX (1x1 conv == channel matmul + leaky relu).
    ref = jnp.einsum("nchw,oc->nohw", x, weight.reshape(C_out, C_in)) \
        + bias.reshape(1, C_out, 1, 1)
    ref = jnp.where(ref >= 0.0, ref, 0.2 * ref)
    assert out.shape == (N, C_out, H, W)
    assert jnp.allclose(out, ref, atol=1e-5), "mismatch vs reference"

    print("KERNEL_OK")
</pallas_src>

<mosaic_0001>
module attributes {stable_mosaic.version = 11 : i64} {
  func.func @kernel(%arg0: i32, %arg1: i32, %arg2: memref<1x4x128xf32, #tpu.memory_space<vmem>>, %arg3: memref<8x4xf32, #tpu.memory_space<vmem>>, %arg4: memref<8x1xf32, #tpu.memory_space<vmem>>, %arg5: memref<1x8x128xf32, #tpu.memory_space<vmem>>) attributes {dimension_semantics = [#tpu.dimension_semantics<parallel>, #tpu.dimension_semantics<parallel>], iteration_bounds = array<i64: 2, 2>, scalar_prefetch = 0 : i64, scratch_operands = 0 : i64, tpu.core_type = #tpu.core_type<tc>, window_params = [{transform_indices = @transform_0, window_bounds = array<i64: 1, 4, 128>}, {pipeline_mode = #tpu.pipeline_mode<synchronous>, transform_indices = @transform_1, window_bounds = array<i64: 8, 4>}, {pipeline_mode = #tpu.pipeline_mode<synchronous>, transform_indices = @transform_2, window_bounds = array<i64: 8, 1>}, {transform_indices = @transform_3, window_bounds = array<i64: 1, 8, 128>}]} {
    %c0 = arith.constant 0 : index
    %c0_0 = arith.constant 0 : index
    %0 = vector.load %arg4[%c0, %c0_0] : memref<8x1xf32, #tpu.memory_space<vmem>>, vector<8x1xf32>
    %c0_1 = arith.constant 0 : index
    %c0_2 = arith.constant 0 : index
    %1 = vector.load %arg3[%c0_1, %c0_2] : memref<8x4xf32, #tpu.memory_space<vmem>>, vector<8x4xf32>
    %2 = vector.shape_cast %0 : vector<8x1xf32> to vector<8x1xf32>
    %3 = vector.broadcast %2 : vector<8x1xf32> to vector<8x128xf32>
    %c0_3 = arith.constant 0 : index
    %c0_4 = arith.constant 0 : index
    %c0_5 = arith.constant 0 : index
    %4 = vector.load %arg2[%c0_3, %c0_4, %c0_5] : memref<1x4x128xf32, #tpu.memory_space<vmem>>, vector<1x4x128xf32>
    %5 = vector.shape_cast %4 : vector<1x4x128xf32> to vector<4x128xf32>
    %6 = vector.extract_strided_slice %1 {offsets = [0, 0], sizes = [8, 1], strides = [1, 1]} : vector<8x4xf32> to vector<8x1xf32>
    %7 = vector.extract_strided_slice %5 {offsets = [0, 0], sizes = [1, 128], strides = [1, 1]} : vector<4x128xf32> to vector<1x128xf32>
    %8 = vector.broadcast %6 : vector<8x1xf32> to vector<8x128xf32>
    %9 = vector.broadcast %7 : vector<1x128xf32> to vector<8x128xf32>
    %10 = arith.mulf %8, %9 : vector<8x128xf32>
    %11 = arith.addf %3, %10 : vector<8x128xf32>
    %12 = vector.extract_strided_slice %1 {offsets = [0, 1], sizes = [8, 1], strides = [1, 1]} : vector<8x4xf32> to vector<8x1xf32>
    %13 = vector.extract_strided_slice %5 {offsets = [1, 0], sizes = [1, 128], strides = [1, 1]} : vector<4x128xf32> to vector<1x128xf32>
    %14 = vector.broadcast %12 : vector<8x1xf32> to vector<8x128xf32>
    %15 = vector.broadcast %13 : vector<1x128xf32> to vector<8x128xf32>
    %16 = arith.mulf %14, %15 : vector<8x128xf32>
    %17 = arith.addf %11, %16 : vector<8x128xf32>
    %18 = vector.extract_strided_slice %1 {offsets = [0, 2], sizes = [8, 1], strides = [1, 1]} : vector<8x4xf32> to vector<8x1xf32>
    %19 = vector.extract_strided_slice %5 {offsets = [2, 0], sizes = [1, 128], strides = [1, 1]} : vector<4x128xf32> to vector<1x128xf32>
    %20 = vector.broadcast %18 : vector<8x1xf32> to vector<8x128xf32>
    %21 = vector.broadcast %19 : vector<1x128xf32> to vector<8x128xf32>
    %22 = arith.mulf %20, %21 : vector<8x128xf32>
    %23 = arith.addf %17, %22 : vector<8x128xf32>
    %24 = vector.extract_strided_slice %1 {offsets = [0, 3], sizes = [8, 1], strides = [1, 1]} : vector<8x4xf32> to vector<8x1xf32>
    %25 = vector.extract_strided_slice %5 {offsets = [3, 0], sizes = [1, 128], strides = [1, 1]} : vector<4x128xf32> to vector<1x128xf32>
    %26 = vector.broadcast %24 : vector<8x1xf32> to vector<8x128xf32>
    %27 = vector.broadcast %25 : vector<1x128xf32> to vector<8x128xf32>
    %28 = arith.mulf %26, %27 : vector<8x128xf32>
    %29 = arith.addf %23, %28 : vector<8x128xf32>
    %cst = arith.constant 0.000000e+00 : f32
    %30 = vector.broadcast %cst : f32 to vector<8x128xf32>
    %31 = arith.cmpf oge, %29, %30 : vector<8x128xf32>
    %cst_6 = arith.constant 2.000000e-01 : f32
    %32 = vector.broadcast %cst_6 : f32 to vector<8x128xf32>
    %33 = arith.mulf %32, %29 : vector<8x128xf32>
    %34 = arith.select %31, %29, %33 : vector<8x128xi1>, vector<8x128xf32>
    %c0_7 = arith.constant 0 : index
    %c0_8 = arith.constant 0 : index
    %c0_9 = arith.constant 0 : index
    %35 = vector.load %arg5[%c0_7, %c0_8, %c0_9] : memref<1x8x128xf32, #tpu.memory_space<vmem>>, vector<1x8x128xf32>
    %36 = vector.shape_cast %35 : vector<1x8x128xf32> to vector<8x128xf32>
    %37 = vector.shape_cast %34 : vector<8x128xf32> to vector<1x8x128xf32>
    tpu.vector_store %arg5[%c0_7, %c0_8, %c0_9], %37 {strides = array<i32>} : memref<1x8x128xf32, #tpu.memory_space<vmem>>, vector<1x8x128xf32>,
    return
  }
  func.func @transform_0(%arg0: i32, %arg1: i32) -> (i32, i32, i32) {
    %c0_i32 = arith.constant 0 : i32
    %c0_i32_0 = arith.constant 0 : i32
    return %arg0, %c0_i32, %arg1 : i32, i32, i32
  }
  func.func @transform_1(%arg0: i32, %arg1: i32) -> (i32, i32) {
    %c0_i32 = arith.constant 0 : i32
    %c0_i32_0 = arith.constant 0 : i32
    %c0_i32_1 = arith.constant 0 : i32
    return %c0_i32, %c0_i32_0 : i32, i32
  }
  func.func @transform_2(%arg0: i32, %arg1: i32) -> (i32, i32) {
    %c0_i32 = arith.constant 0 : i32
    %c0_i32_0 = arith.constant 0 : i32
    %c0_i32_1 = arith.constant 0 : i32
    return %c0_i32, %c0_i32_0 : i32, i32
  }
  func.func @transform_3(%arg0: i32, %arg1: i32) -> (i32, i32, i32) {
    %c0_i32 = arith.constant 0 : i32
    %c0_i32_0 = arith.constant 0 : i32
    return %arg0, %c0_i32, %arg1 : i32, i32, i32
  }
}

</mosaic_0001>

<bundles_post_ra>
// kernel: tpu_custom_call.1
= control target key start
LH: loop header
LB: loop body
LE: loop exit
PB: predicated region body
PF: predicated region fallthrough
CT: control target
= control target key end

     0   :  { %8 = vsyncpa [#allocation3], 0  ;;  %s688_s0 = inlined_call_operand.vmem [shape: f32[2,4,256], index: 0, kind: input, shape index: {}]   ;;  %s689_s1 = inlined_call_operand.vmem [shape: f32[8,4], index: 1, kind: input, shape index: {}]   ;;  %s690_s2 = inlined_call_operand.vmem [shape: f32[8,1], index: 2, kind: input, shape index: {}]   ;;  %s691_s3 = inlined_call_operand.hbm [shape: f32[2,8,256], index: 3, kind: output, shape index: {}]  }
   0x1   :  { %10 = vsyncpa [#allocation3 + $0x1], 0  ;;  %s552_s12 = smov 0   ;;  %s554_s13 = smov 0  }
   0x2   :  { %s556_s14 = smov 0   ;;  %s558_s15 = smov 0  }
   0x3   :  { %s560_s16 = smov 0   ;;  %s562_s17 = smov 0  }
   0x4   :  { %s564_s18 = smov 0   ;;  %s566_s19 = smov 0  }
   0x5 LB: > { %s341_s20 = sadd.s32 4294967295, %s525_s19   ;;  %s342_s21 = sadd.s32 4294967294, %s525_s19   ;;  %s525_s19 = sphi %s566_s19, %s16_s19   ;;  %s521_s18 = sphi %s564_s18, %s700_s18   ;;  %s517_s17 = sphi %s562_s17, %s699_s17   ;;  %s513_s16 = sphi %s560_s16, %s698_s16   ;;  %s509_s15 = sphi %s558_s15, %s697_s15   ;;  %s505_s14 = sphi %s556_s14, %s696_s14   ;;  %s501_s13 = sphi %s554_s13, %s695_s13   ;;  %s497_s12 = sphi %s552_s12, %s694_s12  }
   0x6   : > { %s25_s22 = sadd.s32 1, %s517_s17  ;;  %s28_s23 = sadd.s32 1, %s521_s18 }
   0x7   : > { %p26_p0 = scmp.ge.s32.totalorder %s25_s22, 2  ;;  %p117_p1 = scmp.ne.s32.totalorder %s505_s14, %s501_s13 }
   0x8   : > { %p118_p2 = scmp.eq.s32.totalorder %s341_s20, 3  ;;  %p123_p5 = scmp.ne.s32.totalorder %s501_s13, %s497_s12 }
   0x9   : > { %s702_s22 = smov (%p26_p0, %s25_s22), 0  ;;  %s704_s23 = smov (!%p26_p0, %s28_s23), %s521_s18 }
   0xa   : > { %s103_s24 = ssub.s32 %s517_s17, %s702_s22  ;;  %p603_p3 = por %p118_p2, %p117_p1 }
   0xb   : > { %p30_p4 = scmp.ge.s32.totalorder %s704_s23, 2  ;;  %p124_p6 = scmp.eq.s32.totalorder %s342_s21, 3 }
   0xc   : > { %p345_p7 = scmp.ge.s32.totalorder %s525_s19, 1  ;;  %p159_p9 = scmp.lt.s32.totalorder %s525_s19, 5 }
   0xd   : > { %s706_s23 = smov (%p30_p4, %s704_s23), 0  ;;  %p612_p8 = por %p124_p6, %p123_p5 }
   0xe   : > { %s102_s27 = ssub.s32 %s521_s18, %s706_s23  ;;  %s107_s28 = sadd.s32 1, %s505_s14 }
   0xf   : > { %s104_s29 = sor.u32 %s103_s24, %s102_s27  ;;  %p160_p10 = pnand %p345_p7, %p159_p9 }
  0x10   : > { %p105_p11 = scmp.eq.s32.totalorder %s104_s29, 0  ;;  %p186_p12 = scmp.lt.s32.totalorder (!%p160_p10), %s513_s16, 1 }
  0x11   : > { %163 = sbr.rel (%p160_p10) target bundleno = 177 (0xb1), region = 32  ;;  %p188_p13 = scmp.lt.s32.totalorder (!%p160_p10), %s509_s15, 1 }
  0x12   : > { %s621_s30 = scalar_select %p105_p11, %s505_s14, %s107_s28  }
  0x13   : > { %s183_s28 = sand.u32 (!%p160_p10), 1, %s501_s13   ;;  %s350_s4 = sshll.u32 (!%p160_p10), %s513_s16, 1 }
  0x14   : > { %s346_s29 = sshll.u32 (!%p160_p10), %s183_s28, 3  ;;  %s259_s5 = sadd.s32 (!%p160_p10), %s509_s15, %s350_s4 }
  0x15   : > { %s351_s6 = sshll.u32 (!%p160_p10), %s259_s5, 7  ;;  %s185_s7 = scalar_lea.vmem (!%p160_p10), [#allocation2], %s346_s29 }
  0x16   : > { %v195_v0 = vld [vmem:[%s689_s1] sm:$0xff]  ;;  %v527_v1 = vmov 0   ;;  %v528_v2 = vmov 1   ;;  %v529_v4 = vmov 2   ;;  %v530_v5 = vmov 3   ;;  %s187_s8 = scalar_select %p186_p12, %s513_s16, 1 }
  0x17   : > { %429 = vset.pattern.permute.xlu0 %v527_v1  ;;  %430 = vset.pattern.permute.xlu1 %v528_v2  ;;  %v194_v3 = vld [vmem:[%s690_s2] sm:$0xff]  ;;  %s189_s9 = scalar_select %p188_p13, %s509_s15, 1  ;;  %v207_v6 = vlaneseq }
  0x18   : > { %204 = vperm.xlu0 %429, %v195_v0   ;;  %214 = vperm.xlu1 %430, %v195_v0   ;;  %s347_s10 = sshll.u32 %s187_s8, 1  ;;  %s263_s8 = sshll.u32 %s185_s7, 4  ;;  %s264_s8 = int_to_ptr.vmem [resolvable:$true] %s263_s8 }
  0x19   : > { %s191_s11 = sadd.s32 %s347_s10, %s189_s9  ;;  %v208_v7 = vshrl.u32 %v207_v6, 7  ;;  %s248_s16 = scalar_lea.sflag [#allocation3], %s183_s28 }
  0x1a   : > { %s348_s20 = sshll.u32 %s191_s11, 2  ;;  %s642_s11 = scalar_lea.hbm %s691_s3, %s351_s6 }
  0x1b   : > { %s193_s27 = scalar_lea.vmem %s688_s0, %s348_s20  ;;  %v209_v8 = vsub.s32 0, %v208_v7  ;;  %v219_v10 = vsub.s32 1, %v208_v7  ;;  %v229_v11 = vsub.s32 2, %v208_v7  ;;  %v239_v17 = vsub.s32 3, %v208_v7  ;;  %s433_s20 = scalar_lea.vmem %s264_s8, 128 }
  0x1c   : > { %198 = vperm.xlu0 %429, %v194_v3   ;;  %431 = vset.pattern.permute.xlu1 %v529_v4  ;;  %v201_v9 = vld [vmem:[%s193_s27] sm:$0xf]  ;;  %p434_p0 = scmp.ne.s32.totalorder %s264_s8, %s433_s20  ;;  %s531_s15 = smov [#allocation2]  }
  0x1d   : > { %224 = vperm.xlu1 %431, %v195_v0   ;;  %v210_v12 = vrot.slane %v201_v9, %v209_v8  ;;  %v220_v15 = vrot.slane %v201_v9, %v219_v10  ;;  %v230_v16 = vrot.slane %v201_v9, %v229_v11  ;;  %v240_v24 = vrot.slane %v201_v9, %v239_v17  ;;  %s437_s21 = sshll.u32 %s531_s15, 4  ;;  %s438_s21 = int_to_ptr.vmem [resolvable:$false] %s437_s21 }
  0x1e   : > { %p435_p1 = pnand %p434_p0, %p603_p3  ;;  %s439_s24 = scalar_lea.vmem %s438_s21, 256 }
  0x1f   : > { %p440_p4 = scmp.lt.s32.totalorder %s264_s8, %s438_s21  ;;  %p441_p5 = scmp.lt.s32.totalorder %s439_s24, %s433_s20 }
  0x20   : > { %432 = vset.pattern.permute.xlu0 %v530_v5  ;;  %p436_p2 = pneg %p435_p1 }
  0x21   : > { %234 = vperm.xlu0 %432, %v195_v0   ;;  %p442_p6 = por %p441_p5, %p440_p4 }
  0x23   : > { %p443_p7 = pnand %p442_p6, %p436_p2 }
  0x93   : > { %v205_v13 = vpop.permute.xlu0 %204  ;;  %v215_v14 = vpop.permute.xlu1 %214 }
  0x94   : > { %v211_v18 = vmul.f32 %v210_v12, %v205_v13  ;;  %v221_v20 = vmul.f32 %v220_v15, %v215_v14 }
  0x97   : > { %v199_v19 = vpop.permute.xlu0 %198 }
  0x98   : > { %v212_v21 = vadd.f32 %v211_v18, %v199_v19  ;;  %v225_v22 = vpop.permute.xlu1 %224 }
  0x99   : > { %v231_v23 = vmul.f32 %v230_v16, %v225_v22 }
  0x9a   : > { %v222_v25 = vadd.f32 %v221_v20, %v212_v21 }
  0x9c   : > { %v232_v26 = vadd.f32 %v231_v23, %v222_v25  ;;  %v235_v27 = vpop.permute.xlu0 %234 }
  0x9d   : > { %v241_v28 = vmul.f32 %v240_v24, %v235_v27 }
  0x9f   : > { %v242_v29 = vadd.f32 %v241_v28, %v232_v26 }
  0xa1   : > { %v244_v30 = vmul.f32 0.2, %v242_v29  ;;  %vm243_vm0 = vcmp.ge.f32.partialorder %v242_v29, 0.0 }
  0xa3   : > { %v245_v31 = vsel %vm243_vm0, %v242_v29, %v244_v30 }
  0xa4   : > { %246 = vst [vmem:[%s185_s7] sm:$0xff] %v245_v31 }
  0xa5   : > { %446 = shalt.err (!%p443_p7)
}
  0xa6   : > { %s447_s27 = scalar_lea.hbm %s642_s11, 128  ;;  %s451_s4 = scalar_lea.hbm %s691_s3, 512 }
  0xa7   : > { %p448_p9 = scmp.ne.s32.totalorder %s642_s11, %s447_s27  ;;  %p452_p12 = scmp.lt.s32.totalorder %s642_s11, %s691_s3 }
  0xa8   : > { %p453_p13 = scmp.lt.s32.totalorder %s451_s4, %s447_s27 }
  0xa9   : > { %p449_p10 = pnand %p448_p9, %p603_p3 }
  0xaa   : > { %p454_p0 = por %p453_p13, %p452_p12 }
  0xab   : > { %p450_p11 = pneg %p449_p10 }
  0xad   : > { %p455_p1 = pnand %p454_p0, %p450_p11 }
  0xaf   : > { %458 = shalt.err (!%p455_p1)
}
  0xb0   : > { %354 = dma.vmem_to_hbm [thread:$0]  (%p603_p3), %s264_s8, 128, %s642_s11, %s248_s16  }
  0xb1 PF: > { %p360_p2 = scmp.ge.s32.totalorder %s525_s19, 2  ;;  %s275_s7 = sand.u32 1, %s497_s12  }
  0xb2   : > { %s276_s9 = scalar_lea.sflag [#allocation3], %s275_s7 }
  0xb3   : > { %p357_p4 = pnand %p360_p2, %p612_p8 }
  0xb5   : > { %p358_p5 = pneg %p357_p4 }
  0xb7   : > { %492 = dma.done.wait (%p358_p5), %s276_s9, 128  }
  0xb8   : > { %494 = vsyncadd (%p358_p5), %s276_s9, 4294967168  ;;  %s16_s19 = sadd.s32 1, %s525_s19   ;;  %s694_s12 = smov %s501_s13 }
  0xb9   : > { %p13_p6 = scmp.ge.s32.totalorder %s16_s19, 6   ;;  %s695_s13 = smov %s505_s14 }
  0xba   : > { %s696_s14 = smov %s621_s30  ;;  %s697_s15 = smov %s517_s17 }
  0xbb   : > { %s698_s16 = smov %s521_s18  ;;  %s699_s17 = smov %s702_s22 }
  0xbc   : > { %s700_s18 = smov %s706_s23  ;;  %15 = sbr.rel (!%p13_p6) target bundleno = 5 (0x5), region = 67 }
  0xc1   :  { %281 = vsyncpa [#allocation3], 1 }
  0xc2   :  { %283 = vsyncpa [#allocation3 + $0x1], 1 }

</bundles_post_ra>
